<compile_context>
chip_gen: v7x
topology: tpu7x:2x2x1
jax: 0.10.0
libtpu: 0.0.40
codegen_flags: <defaults>
</compile_context>

<pallas_src>
import functools

import jax
import jax.numpy as jnp
from jax.experimental import pallas as pl
from jax.experimental.pallas import tpu as pltpu

# ----------------------------- model dims -----------------------------------
N_INPUT = 64
N_ENC_1 = 64
N_ENC_2 = 32
N_Z     = 16
N_DEC_1 = 32
N_DEC_2 = 64
N_HEADS = 7                      # lane order: x_bar, mean, pi, disp, beta, gamma, alpha
BATCH   = 16

HEADS_W = N_HEADS * N_INPUT      # 448
Z_OFF   = HEADS_W                # z lives at lanes [448, 464)
OUT_W   = 512                    # lane-dense output slab (448 heads + 16 z + 48 pad)

DENOISE = False
# TODO(synk): denoise=True path (x + randn*sigma) could be added with
#             pltpu.prng_seed / pltpu.stateful_normal if ever needed.


# ------------------------------ the kernel ----------------------------------
def _softplus(v):
    # numerically-stable softplus, identical formulation to jax.nn.softplus
    return jnp.maximum(v, 0.0) + jnp.log1p(jnp.exp(-jnp.abs(v)))


def ae_kernel(x_ref,
              w_e1, b_e1, w_e2, b_e2, w_mu, b_mu,
              w_d1, b_d1, w_d2, b_d2,
              w_heads, b_heads,
              out_ref):
    f32 = jnp.float32
    x = x_ref[...]

    # ---- Encoder ----
    h1 = jnp.maximum(
        jnp.dot(x, w_e1[...], preferred_element_type=f32) + b_e1[...], 0.0)
    h2 = jnp.maximum(
        jnp.dot(h1, w_e2[...], preferred_element_type=f32) + b_e2[...], 0.0)
    z = jnp.dot(h2, w_mu[...], preferred_element_type=f32) + b_mu[...]

    # ---- Decoder trunk ----
    d1 = jnp.maximum(
        jnp.dot(z, w_d1[...], preferred_element_type=f32) + b_d1[...], 0.0)
    d2 = jnp.maximum(
        jnp.dot(d1, w_d2[...], preferred_element_type=f32) + b_d2[...], 0.0)

    # ---- 7 heads fused into one lane-dense (tm, 448) GEMM ----
    s = jnp.dot(d2, w_heads[...], preferred_element_type=f32) + b_heads[...]

    # Per-head activations on static, activation-contiguous lane slices:
    #   lanes [0,64)    x_bar : identity
    #   lanes [64,128)  mean  : MeanAct = clip(exp, 1e-5, 1e6)
    #   lanes [128,192) pi    : sigmoid (tanh form, single EUP op)
    #   lanes [192,448) disp/beta/gamma/alpha : DispAct = clip(softplus, 1e-4, 1e4)
    out_ref[:, 0:N_INPUT] = s[:, 0:N_INPUT]
    out_ref[:, N_INPUT:2 * N_INPUT] = jnp.clip(
        jnp.exp(s[:, N_INPUT:2 * N_INPUT]), 1e-5, 1e6)
    out_ref[:, 2 * N_INPUT:3 * N_INPUT] = (
        0.5 * jnp.tanh(0.5 * s[:, 2 * N_INPUT:3 * N_INPUT]) + 0.5)
    out_ref[:, 3 * N_INPUT:HEADS_W] = jnp.clip(
        _softplus(s[:, 3 * N_INPUT:HEADS_W]), 1e-4, 1e4)

    # z and zero padding complete the lane-dense 512-wide slab.
    out_ref[:, Z_OFF:Z_OFF + N_Z] = z
    out_ref[:, Z_OFF + N_Z:OUT_W] = jnp.zeros(
        (x.shape[0], OUT_W - Z_OFF - N_Z), f32)


# ------------------------------ wrapper --------------------------------------
@functools.partial(jax.jit, static_argnames=("tile_m",))
def ae_forward(x, params, tile_m=256):
    B = x.shape[0]
    # round batch up to a multiple of 8 (sublane), then to a multiple of the tile
    pb = -(-B // 8) * 8
    tm = min(tile_m, pb)
    pb = -(-pb // tm) * tm
    if pb != B:
        x = jnp.pad(x, ((0, pb - B), (0, 0)))

    vmem = pltpu.MemorySpace.VMEM
    x_spec = pl.BlockSpec((tm, N_INPUT), lambda i: (i, 0), memory_space=vmem)
    # Weights/biases: whole-array blocks, index_map -> (0,0) so they stay
    # VMEM-resident across all batch tiles.
    param_specs = [
        pl.BlockSpec(p.shape, lambda i: (0, 0), memory_space=vmem)
        for p in params
    ]
    out_spec = pl.BlockSpec((tm, OUT_W), lambda i: (i, 0), memory_space=vmem)

    out = pl.pallas_call(
        ae_kernel,
        out_shape=jax.ShapeDtypeStruct((pb, OUT_W), jnp.float32),
        grid=(pb // tm,),
        in_specs=[x_spec] + param_specs,
        out_specs=out_spec,
        compiler_params=pltpu.CompilerParams(
            dimension_semantics=("parallel",)),   # v7x: split batch across TCs
    )(x, *params)

    out = out[:B]
    z     = out[:, Z_OFF:Z_OFF + N_Z]
    x_bar = out[:, 0 * N_INPUT:1 * N_INPUT]
    mean  = out[:, 1 * N_INPUT:2 * N_INPUT]
    pi    = out[:, 2 * N_INPUT:3 * N_INPUT]
    disp  = out[:, 3 * N_INPUT:4 * N_INPUT]
    beta  = out[:, 4 * N_INPUT:5 * N_INPUT]
    gamma = out[:, 5 * N_INPUT:6 * N_INPUT]
    alpha = out[:, 6 * N_INPUT:7 * N_INPUT]
    # return in the PyTorch module's order
    return z, x_bar, mean, disp, pi, beta, gamma, alpha


# --------------------------- params + reference ------------------------------
def init_params(key):
    """Deterministic init; weights stored [in, out], biases [1, out].
    The 7 head layers are concatenated along the output dim -> (64, 448) in the
    activation-contiguous lane order [x_bar, mean, pi, disp, beta, gamma, alpha]."""
    def linear(key, fan_in, fan_out):
        kw, kb = jax.random.split(key)
        bound = 1.0 / jnp.sqrt(fan_in)
        w = jax.random.uniform(kw, (fan_in, fan_out), jnp.float32, -bound, bound)
        b = jax.random.uniform(kb, (1, fan_out), jnp.float32, -bound, bound)
        return w, b

    keys = jax.random.split(key, 12)
    w_e1, b_e1 = linear(keys[0], N_INPUT, N_ENC_1)
    w_e2, b_e2 = linear(keys[1], N_ENC_1, N_ENC_2)
    w_mu, b_mu = linear(keys[2], N_ENC_2, N_Z)
    w_d1, b_d1 = linear(keys[3], N_Z, N_DEC_1)
    w_d2, b_d2 = linear(keys[4], N_DEC_1, N_DEC_2)

    # lane order: x_bar, mean, pi, disp, beta, gamma, alpha
    head_ws, head_bs = [], []
    for k in keys[5:12]:
        w, b = linear(k, N_DEC_2, N_INPUT)
        head_ws.append(w)
        head_bs.append(b)
    w_heads = jnp.concatenate(head_ws, axis=1)        # (n_dec_2, 7*n_input)
    b_heads = jnp.concatenate(head_bs, axis=1)        # (1, 7*n_input)

    return (w_e1, b_e1, w_e2, b_e2, w_mu, b_mu,
            w_d1, b_d1, w_d2, b_d2, w_heads, b_heads)


def ae_forward_ref(x, params):
    (w_e1, b_e1, w_e2, b_e2, w_mu, b_mu,
     w_d1, b_d1, w_d2, b_d2, w_heads, b_heads) = params
    h1 = jax.nn.relu(x @ w_e1 + b_e1)
    h2 = jax.nn.relu(h1 @ w_e2 + b_e2)
    z = h2 @ w_mu + b_mu
    d1 = jax.nn.relu(z @ w_d1 + b_d1)
    d2 = jax.nn.relu(d1 @ w_d2 + b_d2)
    s = d2 @ w_heads + b_heads
    parts = [s[:, i * N_INPUT:(i + 1) * N_INPUT] for i in range(N_HEADS)]
    # lane order: x_bar, mean, pi, disp, beta, gamma, alpha
    x_bar = parts[0]
    mean = jnp.clip(jnp.exp(parts[1]), 1e-5, 1e6)
    pi = jax.nn.sigmoid(parts[2])
    disp = jnp.clip(jax.nn.softplus(parts[3]), 1e-4, 1e4)
    beta = jnp.clip(jax.nn.softplus(parts[4]), 1e-4, 1e4)
    gamma = jnp.clip(jax.nn.softplus(parts[5]), 1e-4, 1e4)
    alpha = jnp.clip(jax.nn.softplus(parts[6]), 1e-4, 1e4)
    return z, x_bar, mean, disp, pi, beta, gamma, alpha


# --------------------------------- main ---------------------------------------
if __name__ == "__main__":
    key = jax.random.PRNGKey(0)
    kx, kp = jax.random.split(key)
    x = jax.random.normal(kx, (BATCH, N_INPUT), jnp.float32)
    params = init_params(kp)

    outs = ae_forward(x, params)
    outs = jax.block_until_ready(outs)

    refs = ae_forward_ref(x, params)
    names = ["z", "x_bar", "mean", "disp", "pi", "beta", "gamma", "alpha"]
    for name, o, r in zip(names, outs, refs):
        assert o.shape == r.shape, (name, o.shape, r.shape)
        assert jnp.allclose(o, r, rtol=1e-5, atol=1e-5), name

    print("KERNEL_OK")
</pallas_src>

<mosaic_0001>
module attributes {stable_mosaic.version = 11 : i64} {
  func.func @ae_kernel(%arg0: i32, %arg1: memref<16x64xf32, #tpu.memory_space<vmem>>, %arg2: memref<64x64xf32, #tpu.memory_space<vmem>>, %arg3: memref<1x64xf32, #tpu.memory_space<vmem>>, %arg4: memref<64x32xf32, #tpu.memory_space<vmem>>, %arg5: memref<1x32xf32, #tpu.memory_space<vmem>>, %arg6: memref<32x16xf32, #tpu.memory_space<vmem>>, %arg7: memref<1x16xf32, #tpu.memory_space<vmem>>, %arg8: memref<16x32xf32, #tpu.memory_space<vmem>>, %arg9: memref<1x32xf32, #tpu.memory_space<vmem>>, %arg10: memref<32x64xf32, #tpu.memory_space<vmem>>, %arg11: memref<1x64xf32, #tpu.memory_space<vmem>>, %arg12: memref<64x448xf32, #tpu.memory_space<vmem>>, %arg13: memref<1x448xf32, #tpu.memory_space<vmem>>, %arg14: memref<16x512xf32, #tpu.memory_space<vmem>>) attributes {dimension_semantics = [#tpu.dimension_semantics<parallel>], iteration_bounds = array<i64: 1>, scalar_prefetch = 0 : i64, scratch_operands = 0 : i64, tpu.core_type = #tpu.core_type<tc>, window_params = [{transform_indices = @transform_0, window_bounds = array<i64: 16, 64>}, {pipeline_mode = #tpu.pipeline_mode<synchronous>, transform_indices = @transform_1, window_bounds = array<i64: 64, 64>}, {pipeline_mode = #tpu.pipeline_mode<synchronous>, transform_indices = @transform_2, window_bounds = array<i64: 1, 64>}, {pipeline_mode = #tpu.pipeline_mode<synchronous>, transform_indices = @transform_3, window_bounds = array<i64: 64, 32>}, {pipeline_mode = #tpu.pipeline_mode<synchronous>, transform_indices = @transform_4, window_bounds = array<i64: 1, 32>}, {pipeline_mode = #tpu.pipeline_mode<synchronous>, transform_indices = @transform_5, window_bounds = array<i64: 32, 16>}, {pipeline_mode = #tpu.pipeline_mode<synchronous>, transform_indices = @transform_6, window_bounds = array<i64: 1, 16>}, {pipeline_mode = #tpu.pipeline_mode<synchronous>, transform_indices = @transform_7, window_bounds = array<i64: 16, 32>}, {pipeline_mode = #tpu.pipeline_mode<synchronous>, transform_indices = @transform_8, window_bounds = array<i64: 1, 32>}, {pipeline_mode = #tpu.pipeline_mode<synchronous>, transform_indices = @transform_9, window_bounds = array<i64: 32, 64>}, {pipeline_mode = #tpu.pipeline_mode<synchronous>, transform_indices = @transform_10, window_bounds = array<i64: 1, 64>}, {pipeline_mode = #tpu.pipeline_mode<synchronous>, transform_indices = @transform_11, window_bounds = array<i64: 64, 448>}, {pipeline_mode = #tpu.pipeline_mode<synchronous>, transform_indices = @transform_12, window_bounds = array<i64: 1, 448>}, {transform_indices = @transform_13, window_bounds = array<i64: 16, 512>}]} {
    %c0 = arith.constant 0 : index
    %c0_0 = arith.constant 0 : index
    %0 = vector.load %arg1[%c0, %c0_0] : memref<16x64xf32, #tpu.memory_space<vmem>>, vector<16x64xf32>
    %c0_1 = arith.constant 0 : index
    %c0_2 = arith.constant 0 : index
    %1 = vector.load %arg2[%c0_1, %c0_2] : memref<64x64xf32, #tpu.memory_space<vmem>>, vector<64x64xf32>
    %cst = arith.constant dense<0.000000e+00> : vector<16x64xf32>
    %2 = tpu.matmul %0, %1, %cst {dimension_numbers = #tpu.dot_dimension_numbers<[1], [0], [0], [1], [0, 0, 1, 1], [], []>} : vector<16x64xf32>, vector<64x64xf32>, vector<16x64xf32> -> vector<16x64xf32>
    %c0_3 = arith.constant 0 : index
    %c0_4 = arith.constant 0 : index
    %3 = vector.load %arg3[%c0_3, %c0_4] : memref<1x64xf32, #tpu.memory_space<vmem>>, vector<1x64xf32>
    %4 = vector.broadcast %3 : vector<1x64xf32> to vector<16x64xf32>
    %5 = arith.addf %2, %4 : vector<16x64xf32>
    %cst_5 = arith.constant 0.000000e+00 : f32
    %6 = vector.broadcast %cst_5 : f32 to vector<16x64xf32>
    %7 = arith.maximumf %5, %6 : vector<16x64xf32>
    %c0_6 = arith.constant 0 : index
    %c0_7 = arith.constant 0 : index
    %8 = vector.load %arg4[%c0_6, %c0_7] : memref<64x32xf32, #tpu.memory_space<vmem>>, vector<64x32xf32>
    %cst_8 = arith.constant dense<0.000000e+00> : vector<16x32xf32>
    %9 = tpu.matmul %7, %8, %cst_8 {dimension_numbers = #tpu.dot_dimension_numbers<[1], [0], [0], [1], [0, 0, 1, 1], [], []>} : vector<16x64xf32>, vector<64x32xf32>, vector<16x32xf32> -> vector<16x32xf32>
    %c0_9 = arith.constant 0 : index
    %c0_10 = arith.constant 0 : index
    %10 = vector.load %arg5[%c0_9, %c0_10] : memref<1x32xf32, #tpu.memory_space<vmem>>, vector<1x32xf32>
    %11 = vector.broadcast %10 : vector<1x32xf32> to vector<16x32xf32>
    %12 = arith.addf %9, %11 : vector<16x32xf32>
    %cst_11 = arith.constant 0.000000e+00 : f32
    %13 = vector.broadcast %cst_11 : f32 to vector<16x32xf32>
    %14 = arith.maximumf %12, %13 : vector<16x32xf32>
    %c0_12 = arith.constant 0 : index
    %c0_13 = arith.constant 0 : index
    %15 = vector.load %arg6[%c0_12, %c0_13] : memref<32x16xf32, #tpu.memory_space<vmem>>, vector<32x16xf32>
    %cst_14 = arith.constant dense<0.000000e+00> : vector<16x16xf32>
    %16 = tpu.matmul %14, %15, %cst_14 {dimension_numbers = #tpu.dot_dimension_numbers<[1], [0], [0], [1], [0, 0, 1, 1], [], []>} : vector<16x32xf32>, vector<32x16xf32>, vector<16x16xf32> -> vector<16x16xf32>
    %c0_15 = arith.constant 0 : index
    %c0_16 = arith.constant 0 : index
    %17 = vector.load %arg7[%c0_15, %c0_16] : memref<1x16xf32, #tpu.memory_space<vmem>>, vector<1x16xf32>
    %18 = vector.broadcast %17 : vector<1x16xf32> to vector<16x16xf32>
    %19 = arith.addf %16, %18 : vector<16x16xf32>
    %c0_17 = arith.constant 0 : index
    %c0_18 = arith.constant 0 : index
    %20 = vector.load %arg8[%c0_17, %c0_18] : memref<16x32xf32, #tpu.memory_space<vmem>>, vector<16x32xf32>
    %cst_19 = arith.constant dense<0.000000e+00> : vector<16x32xf32>
    %21 = tpu.matmul %19, %20, %cst_19 {dimension_numbers = #tpu.dot_dimension_numbers<[1], [0], [0], [1], [0, 0, 1, 1], [], []>} : vector<16x16xf32>, vector<16x32xf32>, vector<16x32xf32> -> vector<16x32xf32>
    %c0_20 = arith.constant 0 : index
    %c0_21 = arith.constant 0 : index
    %22 = vector.load %arg9[%c0_20, %c0_21] : memref<1x32xf32, #tpu.memory_space<vmem>>, vector<1x32xf32>
    %23 = vector.broadcast %22 : vector<1x32xf32> to vector<16x32xf32>
    %24 = arith.addf %21, %23 : vector<16x32xf32>
    %cst_22 = arith.constant 0.000000e+00 : f32
    %25 = vector.broadcast %cst_22 : f32 to vector<16x32xf32>
    %26 = arith.maximumf %24, %25 : vector<16x32xf32>
    %c0_23 = arith.constant 0 : index
    %c0_24 = arith.constant 0 : index
    %27 = vector.load %arg10[%c0_23, %c0_24] : memref<32x64xf32, #tpu.memory_space<vmem>>, vector<32x64xf32>
    %cst_25 = arith.constant dense<0.000000e+00> : vector<16x64xf32>
    %28 = tpu.matmul %26, %27, %cst_25 {dimension_numbers = #tpu.dot_dimension_numbers<[1], [0], [0], [1], [0, 0, 1, 1], [], []>} : vector<16x32xf32>, vector<32x64xf32>, vector<16x64xf32> -> vector<16x64xf32>
    %c0_26 = arith.constant 0 : index
    %c0_27 = arith.constant 0 : index
    %29 = vector.load %arg11[%c0_26, %c0_27] : memref<1x64xf32, #tpu.memory_space<vmem>>, vector<1x64xf32>
    %30 = vector.broadcast %29 : vector<1x64xf32> to vector<16x64xf32>
    %31 = arith.addf %28, %30 : vector<16x64xf32>
    %cst_28 = arith.constant 0.000000e+00 : f32
    %32 = vector.broadcast %cst_28 : f32 to vector<16x64xf32>
    %33 = arith.maximumf %31, %32 : vector<16x64xf32>
    %c0_29 = arith.constant 0 : index
    %c0_30 = arith.constant 0 : index
    %34 = vector.load %arg12[%c0_29, %c0_30] : memref<64x448xf32, #tpu.memory_space<vmem>>, vector<64x448xf32>
    %cst_31 = arith.constant dense<0.000000e+00> : vector<16x448xf32>
    %35 = tpu.matmul %33, %34, %cst_31 {dimension_numbers = #tpu.dot_dimension_numbers<[1], [0], [0], [1], [0, 0, 1, 1], [], []>} : vector<16x64xf32>, vector<64x448xf32>, vector<16x448xf32> -> vector<16x448xf32>
    %c0_32 = arith.constant 0 : index
    %c0_33 = arith.constant 0 : index
    %36 = vector.load %arg13[%c0_32, %c0_33] : memref<1x448xf32, #tpu.memory_space<vmem>>, vector<1x448xf32>
    %37 = vector.broadcast %36 : vector<1x448xf32> to vector<16x448xf32>
    %38 = arith.addf %35, %37 : vector<16x448xf32>
    %39 = vector.extract_strided_slice %38 {offsets = [0, 0], sizes = [16, 64], strides = [1, 1]} : vector<16x448xf32> to vector<16x64xf32>
    %c0_34 = arith.constant 0 : index
    %c0_35 = arith.constant 0 : index
    %40 = vector.load %arg14[%c0_34, %c0_35] : memref<16x512xf32, #tpu.memory_space<vmem>>, vector<16x64xf32>
    tpu.vector_store %arg14[%c0_34, %c0_35], %39 {strides = array<i32>} : memref<16x512xf32, #tpu.memory_space<vmem>>, vector<16x64xf32>,
    %41 = vector.extract_strided_slice %38 {offsets = [0, 64], sizes = [16, 64], strides = [1, 1]} : vector<16x448xf32> to vector<16x64xf32>
    %42 = math.exp %41 : vector<16x64xf32>
    %cst_36 = arith.constant 9.99999974E-6 : f32
    %cst_37 = arith.constant 1.000000e+06 : f32
    %43 = vector.broadcast %cst_36 : f32 to vector<16x64xf32>
    %44 = arith.maximumf %43, %42 : vector<16x64xf32>
    %45 = vector.broadcast %cst_37 : f32 to vector<16x64xf32>
    %46 = arith.minimumf %45, %44 : vector<16x64xf32>
    %c0_38 = arith.constant 0 : index
    %c64 = arith.constant 64 : index
    %47 = vector.load %arg14[%c0_38, %c64] : memref<16x512xf32, #tpu.memory_space<vmem>>, vector<16x64xf32>
    tpu.vector_store %arg14[%c0_38, %c64], %46 {strides = array<i32>} : memref<16x512xf32, #tpu.memory_space<vmem>>, vector<16x64xf32>,
    %48 = vector.extract_strided_slice %38 {offsets = [0, 128], sizes = [16, 64], strides = [1, 1]} : vector<16x448xf32> to vector<16x64xf32>
    %cst_39 = arith.constant 5.000000e-01 : f32
    %49 = vector.broadcast %cst_39 : f32 to vector<16x64xf32>
    %50 = arith.mulf %49, %48 : vector<16x64xf32>
    %51 = math.tanh %50 : vector<16x64xf32>
    %cst_40 = arith.constant 5.000000e-01 : f32
    %52 = vector.broadcast %cst_40 : f32 to vector<16x64xf32>
    %53 = arith.mulf %52, %51 : vector<16x64xf32>
    %cst_41 = arith.constant 5.000000e-01 : f32
    %54 = vector.broadcast %cst_41 : f32 to vector<16x64xf32>
    %55 = arith.addf %53, %54 : vector<16x64xf32>
    %c0_42 = arith.constant 0 : index
    %c128 = arith.constant 128 : index
    %56 = vector.load %arg14[%c0_42, %c128] : memref<16x512xf32, #tpu.memory_space<vmem>>, vector<16x64xf32>
    tpu.vector_store %arg14[%c0_42, %c128], %55 {strides = array<i32>} : memref<16x512xf32, #tpu.memory_space<vmem>>, vector<16x64xf32>,
    %57 = vector.extract_strided_slice %38 {offsets = [0, 192], sizes = [16, 256], strides = [1, 1]} : vector<16x448xf32> to vector<16x256xf32>
    %cst_43 = arith.constant 0.000000e+00 : f32
    %58 = vector.broadcast %cst_43 : f32 to vector<16x256xf32>
    %59 = arith.maximumf %57, %58 : vector<16x256xf32>
    %60 = math.absf %57 : vector<16x256xf32>
    %cst_44 = arith.constant 0.000000e+00 : f32
    %61 = vector.broadcast %cst_44 : f32 to vector<16x256xf32>
    %62 = arith.subf %61, %60 : vector<16x256xf32>
    %63 = math.exp %62 : vector<16x256xf32>
    %64 = math.log1p %63 : vector<16x256xf32>
    %65 = arith.addf %59, %64 : vector<16x256xf32>
    %cst_45 = arith.constant 9.99999974E-5 : f32
    %cst_46 = arith.constant 1.000000e+04 : f32
    %66 = vector.broadcast %cst_45 : f32 to vector<16x256xf32>
    %67 = arith.maximumf %66, %65 : vector<16x256xf32>
    %68 = vector.broadcast %cst_46 : f32 to vector<16x256xf32>
    %69 = arith.minimumf %68, %67 : vector<16x256xf32>
    %c0_47 = arith.constant 0 : index
    %c192 = arith.constant 192 : index
    %70 = vector.load %arg14[%c0_47, %c192] : memref<16x512xf32, #tpu.memory_space<vmem>>, vector<16x256xf32>
    tpu.vector_store %arg14[%c0_47, %c192], %69 {strides = array<i32>} : memref<16x512xf32, #tpu.memory_space<vmem>>, vector<16x256xf32>,
    %c0_48 = arith.constant 0 : index
    %c448 = arith.constant 448 : index
    %71 = vector.load %arg14[%c0_48, %c448] : memref<16x512xf32, #tpu.memory_space<vmem>>, vector<16x16xf32>
    tpu.vector_store %arg14[%c0_48, %c448], %19 {strides = array<i32>} : memref<16x512xf32, #tpu.memory_space<vmem>>, vector<16x16xf32>,
    %cst_49 = arith.constant 0.000000e+00 : f32
    %72 = vector.broadcast %cst_49 : f32 to vector<16x48xf32>
    %c0_50 = arith.constant 0 : index
    %c464 = arith.constant 464 : index
    %73 = vector.load %arg14[%c0_50, %c464] : memref<16x512xf32, #tpu.memory_space<vmem>>, vector<16x48xf32>
    tpu.vector_store %arg14[%c0_50, %c464], %72 {strides = array<i32>} : memref<16x512xf32, #tpu.memory_space<vmem>>, vector<16x48xf32>,
    return
  }
  func.func @transform_0(%arg0: i32) -> (i32, i32) {
    %c0_i32 = arith.constant 0 : i32
    %c0_i32_0 = arith.constant 0 : i32
    return %arg0, %c0_i32 : i32, i32
  }
  func.func @transform_1(%arg0: i32) -> (i32, i32) {
    %c0_i32 = arith.constant 0 : i32
    %c0_i32_0 = arith.constant 0 : i32
    %c0_i32_1 = arith.constant 0 : i32
    return %c0_i32, %c0_i32_0 : i32, i32
  }
  func.func @transform_2(%arg0: i32) -> (i32, i32) {
    %c0_i32 = arith.constant 0 : i32
    %c0_i32_0 = arith.constant 0 : i32
    %c0_i32_1 = arith.constant 0 : i32
    return %c0_i32, %c0_i32_0 : i32, i32
  }
  func.func @transform_3(%arg0: i32) -> (i32, i32) {
    %c0_i32 = arith.constant 0 : i32
    %c0_i32_0 = arith.constant 0 : i32
    %c0_i32_1 = arith.constant 0 : i32
    return %c0_i32, %c0_i32_0 : i32, i32
  }
  func.func @transform_4(%arg0: i32) -> (i32, i32) {
    %c0_i32 = arith.constant 0 : i32
    %c0_i32_0 = arith.constant 0 : i32
    %c0_i32_1 = arith.constant 0 : i32
    return %c0_i32, %c0_i32_0 : i32, i32
  }
  func.func @transform_5(%arg0: i32) -> (i32, i32) {
    %c0_i32 = arith.constant 0 : i32
    %c0_i32_0 = arith.constant 0 : i32
    %c0_i32_1 = arith.constant 0 : i32
    return %c0_i32, %c0_i32_0 : i32, i32
  }
  func.func @transform_6(%arg0: i32) -> (i32, i32) {
    %c0_i32 = arith.constant 0 : i32
    %c0_i32_0 = arith.constant 0 : i32
    %c0_i32_1 = arith.constant 0 : i32
    return %c0_i32, %c0_i32_0 : i32, i32
  }
  func.func @transform_7(%arg0: i32) -> (i32, i32) {
    %c0_i32 = arith.constant 0 : i32
    %c0_i32_0 = arith.constant 0 : i32
    %c0_i32_1 = arith.constant 0 : i32
    return %c0_i32, %c0_i32_0 : i32, i32
  }
  func.func @transform_8(%arg0: i32) -> (i32, i32) {
    %c0_i32 = arith.constant 0 : i32
    %c0_i32_0 = arith.constant 0 : i32
    %c0_i32_1 = arith.constant 0 : i32
    return %c0_i32, %c0_i32_0 : i32, i32
  }
  func.func @transform_9(%arg0: i32) -> (i32, i32) {
    %c0_i32 = arith.constant 0 : i32
    %c0_i32_0 = arith.constant 0 : i32
    %c0_i32_1 = arith.constant 0 : i32
    return %c0_i32, %c0_i32_0 : i32, i32
  }
  func.func @transform_10(%arg0: i32) -> (i32, i32) {
    %c0_i32 = arith.constant 0 : i32
    %c0_i32_0 = arith.constant 0 : i32
    %c0_i32_1 = arith.constant 0 : i32
    return %c0_i32, %c0_i32_0 : i32, i32
  }
  func.func @transform_11(%arg0: i32) -> (i32, i32) {
    %c0_i32 = arith.constant 0 : i32
    %c0_i32_0 = arith.constant 0 : i32
    %c0_i32_1 = arith.constant 0 : i32
    return %c0_i32, %c0_i32_0 : i32, i32
  }
  func.func @transform_12(%arg0: i32) -> (i32, i32) {
    %c0_i32 = arith.constant 0 : i32
    %c0_i32_0 = arith.constant 0 : i32
    %c0_i32_1 = arith.constant 0 : i32
    return %c0_i32, %c0_i32_0 : i32, i32
  }
  func.func @transform_13(%arg0: i32) -> (i32, i32) {
    %c0_i32 = arith.constant 0 : i32
    %c0_i32_0 = arith.constant 0 : i32
    return %arg0, %c0_i32 : i32, i32
  }
}

</mosaic_0001>

<bundles_post_ra>
// kernel: ae_forward.1
= control target key start
LH: loop header
LB: loop body
LE: loop exit
PB: predicated region body
PF: predicated region fallthrough
CT: control target
= control target key end

     0   :  { %18 = vsyncpa [#allocation3], 0  ;;  %s1534_s0 = inlined_call_operand.vmem [shape: f32[16,64], index: 0, kind: input, shape index: {}]   ;;  %s1535_s1 = inlined_call_operand.vmem [shape: f32[64,64], index: 1, kind: input, shape index: {}]   ;;  %s1536_s2 = inlined_call_operand.vmem [shape: f32[1,64], index: 2, kind: input, shape index: {}]   ;;  %s1537_s3 = inlined_call_operand.vmem [shape: f32[64,32], index: 3, kind: input, shape index: {}]   ;;  %s1538_s4 = inlined_call_operand.vmem [shape: f32[1,32], index: 4, kind: input, shape index: {}]   ;;  %s1539_s5 = inlined_call_operand.vmem [shape: f32[32,16], index: 5, kind: input, shape index: {}]   ;;  %s1540_s6 = inlined_call_operand.vmem [shape: f32[1,16], index: 6, kind: input, shape index: {}]   ;;  %s1541_s7 = inlined_call_operand.vmem [shape: f32[16,32], index: 7, kind: input, shape index: {}]   ;;  %s1542_s8 = inlined_call_operand.vmem [shape: f32[1,32], index: 8, kind: input, shape index: {}]   ;;  %s1543_s9 = inlined_call_operand.vmem [shape: f32[32,64], index: 9, kind: input, shape index: {}]   ;;  %s1544_s10 = inlined_call_operand.hbm [shape: f32[1,64], index: 10, kind: input, shape index: {}]   ;;  %s1545_s11 = inlined_call_operand.hbm [shape: f32[64,448], index: 11, kind: input, shape index: {}]   ;;  %s1546_s12 = inlined_call_operand.vmem [shape: f32[1,448], index: 12, kind: input, shape index: {}]   ;;  %s1547_s13 = inlined_call_operand.vmem [shape: f32[16,512], index: 13, kind: output, shape index: {}]  }
   0x1   :  { %19 = vsyncpa [#allocation5], 0  ;;  %s1204_s25 = smov [#allocation2]   ;;  %s1205_s27 = smov [#allocation4]  }
   0x2   :  { %s46_s26 = sshll.u32 %s1204_s25, 4  ;;  %s55_s28 = sshll.u32 %s1205_s27, 4  ;;  %s47_s26 = int_to_ptr.vmem [resolvable:$true] %s46_s26  ;;  %s1280_s28 = int_to_ptr.vmem [resolvable:$true] %s55_s28 }
   0x3   :  { %s1156_s14 = scalar_lea.hbm %s1544_s10, 16 }
   0x4   :  { %p1157_p0 = scmp.ne.s32.totalorder %s1544_s10, %s1156_s14  ;;  %p1160_p1 = scmp.lt.u32.totalorder %s1156_s14, %s1544_s10 }
   0x6   :  { %p1162_p2 = pnand %p1160_p1, %p1157_p0 }
   0x8   :  { %1165 = shalt.err (!%p1162_p2)
}
   0x9   :  { %s1166_s19 = scalar_lea.vmem %s47_s26, 16  ;;  %s1170_s20 = scalar_lea.vmem %s47_s26, 32 }
   0xa   :  { %p1167_p3 = scmp.ne.s32.totalorder %s47_s26, %s1166_s19  ;;  %p1171_p4 = scmp.lt.s32.totalorder %s47_s26, %s47_s26 }
   0xb   :  { %p1172_p5 = scmp.lt.s32.totalorder %s1170_s20, %s1166_s19 }
   0xd   :  { %p1173_p6 = por %p1172_p5, %p1171_p4 }
   0xf   :  { %p1174_p7 = pnand %p1173_p6, %p1167_p3 }
  0x11   :  { %1177 = shalt.err (!%p1174_p7)
}
  0x12   :  { %49 = dma.hbm_to_vmem [thread:$0]  %s1544_s10, 16, %s47_s26, [#allocation3]  }
  0x13   :  { %s1178_s25 = scalar_lea.hbm %s1545_s11, 4096 }
  0x14   :  { %p1179_p8 = scmp.ne.s32.totalorder %s1545_s11, %s1178_s25  ;;  %p1182_p9 = scmp.lt.u32.totalorder %s1178_s25, %s1545_s11 }
  0x16   :  { %p1184_p10 = pnand %p1182_p9, %p1179_p8 }
  0x18   :  { %1187 = shalt.err (!%p1184_p10)
}
  0x19   :  { %s1188_s15 = scalar_lea.vmem %s1280_s28, 4096  ;;  %p1193_p12 = scmp.lt.s32.totalorder %s1280_s28, %s1280_s28 }
  0x1a   :  { %p1189_p11 = scmp.ne.s32.totalorder %s1280_s28, %s1188_s15  ;;  %p1194_p13 = scmp.lt.s32.totalorder %s1188_s15, %s1188_s15 }
  0x1c   :  { %p1195_p0 = por %p1194_p13, %p1193_p12 }
  0x1e   :  { %p1196_p1 = pnand %p1195_p0, %p1189_p11 }
  0x20   :  { %1199 = shalt.err (!%p1196_p1)
}
  0x21   :  { %s1206_s10 = smov 512   ;;  %s1207_s26 = smov 32  }
  0x22   :  { %61 = dma.hbm_to_vmem [thread:$0]  %s1545_s11, 4096, %s1280_s28, [#allocation5], %s1206_s10, %s1206_s10, %s1207_s26  }
  0x23   :  { %1200 = dma.done.wait [#allocation3], 16  }
  0x24   :  { %1201 = vsyncadd [#allocation3], 4294967280 }
  0x25   :  { %1202 = dma.done.wait [#allocation5], 4096  }
  0x26   :  { %1203 = vsyncadd [#allocation5], 4294963200  ;;  %v72_v0 = vld [vmem:[%s1535_s1] sm:$0xff]  ;;  %v73_v1 = vld [vmem:[%s1535_s1 + $0x8] sm:$0xff]  ;;  %vm87_vm0 = vcmask 523264   ;;  %vm280_vm1 = vcmask 261120  }
  0x27   :  { %v74_v2 = vld [vmem:[%s1535_s1 + $0x10] sm:$0xff]  ;;  %v1034_v3 = vpack.c.bf16 %v73_v1, %v72_v0  ;;  %v75_v4 = vld [vmem:[%s1535_s1 + $0x18] sm:$0xff]  ;;  %v76_v6 = vld [vmem:[%s1535_s1 + $0x20] sm:$0xff]  ;;  %vm371_vm2 = vcmask 130048   ;;  %vm773_vm3 = vcmask 1048064   ;;  %vm900_vm6 = vcmask 654848  }
  0x28   :  { %v1038_v5 = vpack.c.bf16 %v75_v4, %v74_v2  ;;  %v77_v7 = vld [vmem:[%s1535_s1 + $0x28] sm:$0xff]  ;;  %v70_v8 = vld [vmem:[%s1534_s0] sm:$0xff]  ;;  %v173_v12 = vld [vmem:[%s1537_s3 + $0x10] sm:$0xff]  ;;  %vm903_vm7 = vcmask 1048192  }
  0x29   :  { %1035 = vmatprep.subr.bf16.mxu0 %v1034_v3  ;;  %983 = vmatprep.mubr.msk.f32.mxu0 %vm87_vm0, %v70_v8  ;;  %v171_v9 = vld [vmem:[%s1537_s3] sm:$0xff]  ;;  %v172_v10 = vld [vmem:[%s1537_s3 + $0x8] sm:$0xff]  ;;  %v174_v13 = vld [vmem:[%s1537_s3 + $0x18] sm:$0xff]  ;;  %v1042_v14 = vpack.c.bf16 %v77_v7, %v76_v6 }
  0x2a   :  { %1037 = vmatpush3.bf16.msra.mxu0 %v1034_v3  ;;  %v1050_v11 = vpack.c.bf16 %v172_v10, %v171_v9  ;;  %v1054_v15 = vpack.c.bf16 %v174_v13, %v173_v12  ;;  %v175_v16 = vld [vmem:[%s1537_s3 + $0x20] sm:$0xff]  ;;  %v176_v17 = vld [vmem:[%s1537_s3 + $0x28] sm:$0xff]  ;;  %v78_v18 = vld [vmem:[%s1535_s1 + $0x30] sm:$0xff] }
  0x2b   :  { %1039 = vmatprep.subr.bf16.mxu0 %v1038_v5  ;;  %v79_v19 = vld [vmem:[%s1535_s1 + $0x38] sm:$0xff]  ;;  %v1058_v20 = vpack.c.bf16 %v176_v17, %v175_v16  ;;  %v71_v22 = vld [vmem:[%s1534_s0 + $0x8] sm:$0xff]  ;;  %v177_v23 = vld [vmem:[%s1537_s3 + $0x30] sm:$0xff] }
  0x2c   :  { %1051 = vmatprep.subr.bf16.mxu1 %v1050_v11  ;;  %v1046_v21 = vpack.c.bf16 %v79_v19, %v78_v18  ;;  %v178_v24 = vld [vmem:[%s1537_s3 + $0x38] sm:$0xff]  ;;  %v269_v26 = vld [vmem:[%s1539_s5] sm:$0xff]  ;;  %v270_v27 = vld [vmem:[%s1539_s5 + $0x8] sm:$0xff] }
  0x2d   :  { %1053 = vmatpush3.bf16.msra.mxu1 %v1050_v11  ;;  %v1062_v25 = vpack.c.bf16 %v178_v24, %v177_v23  ;;  %v1066_v28 = vpack.c.bf16 %v270_v27, %v269_v26  ;;  %v912_v29 = vld [vmem:[%s1536_s2] ss:$0 sm:$0xff]  ;;  %v271_v36 = vld [vmem:[%s1539_s5 + $0x10] sm:$0xff]  ;;  %v272_v37 = vld [vmem:[%s1539_s5 + $0x18] sm:$0xff] }
  0x2e   :  { %1041 = vmatpush3.bf16.msra.mxu0 %v1038_v5  ;;  %1055 = vmatprep.subr.bf16.mxu1 %v1054_v15  ;;  %v1070_v38 = vpack.c.bf16 %v272_v37, %v271_v36  ;;  %v915_v39 = vld [vmem:[%s1538_s4] ss:$0 sm:$0xff]  ;;  %v363_v47 = vld [vmem:[%s1541_s7 + $0x8] sm:$0xff]  ;;  %v457_v57 = vld [vmem:[%s1543_s9 + $0x10] sm:$0xff] }
  0x2f   :  { %1043 = vmatprep.subr.bf16.mxu0 %v1042_v14  ;;  %v362_v46 = vld [vmem:[%s1541_s7] sm:$0xff]  ;;  %v456_v50 = vld [vmem:[%s1543_s9 + $0x8] sm:$0xff]  ;;  %s1208_s7 = smov 64   ;;  %v458_v58 = vld [vmem:[%s1543_s9 + $0x18] sm:$0xff] }
  0x30   :  { %v1074_v48 = vpack.c.bf16 %v363_v47, %v362_v46  ;;  %v455_v49 = vld [vmem:[%s1543_s9] sm:$0xff]  ;;  %v1082_v59 = vpack.c.bf16 %v458_v58, %v457_v57  ;;  %v550_v60 = vld [vmem:[#allocation4 + $0x8] sm:$0xff]  ;;  %v567_v36 = vld [vmem:[#allocation4 + $0x90] sm:$0xff] }
  0x31   :  { %1057 = vmatpush3.bf16.msra.mxu1 %v1054_v15  ;;  %v1078_v51 = vpack.c.bf16 %v456_v50, %v455_v49  ;;  %v918_v52 = vld [vmem:[%s1540_s6] ss:$0 sm:$0xff]  ;;  %v554_v61 = vld [vmem:[#allocation4 + $0x28] sm:$0xff]  ;;  %v549_v1 = vld [vmem:[#allocation4] sm:$0xff] }
  0x32   :  { %1045 = vmatpush3.bf16.msra.mxu0 %v1042_v14  ;;  %1059 = vmatprep.subr.bf16.mxu1 %v1058_v20  ;;  %v552_v62 = vld [vmem:[#allocation4 + $0x18] sm:$0xff]  ;;  %v1086_v63 = vpack.c.bf16 %v554_v61, %v550_v60  ;;  %v553_v2 = vld [vmem:[#allocation4 + $0x20] sm:$0xff]  ;;  %v558_v5 = vld [vmem:[#allocation4 + $0x48] sm:$0xff] }
  0x33   :  { %1047 = vmatprep.subr.bf16.mxu0 %v1046_v21  ;;  %v556_v0 = vld [vmem:[#allocation4 + $0x38] sm:$0xff]  ;;  %v1088_v4 = vpack.c.bf16 %v553_v2, %v549_v1  ;;  %v562_v6 = vld [vmem:[#allocation4 + $0x68] sm:$0xff]  ;;  %v557_v8 = vld [vmem:[#allocation4 + $0x40] sm:$0xff] }
  0x34   :  { %v1102_v3 = vpack.c.bf16 %v556_v0, %v552_v62  ;;  %v1090_v7 = vpack.c.bf16 %v562_v6, %v558_v5  ;;  %v561_v9 = vld [vmem:[#allocation4 + $0x60] sm:$0xff]  ;;  %v566_v11 = vld [vmem:[#allocation4 + $0x88] sm:$0xff]  ;;  %v921_v17 = vld [vmem:[%s1542_s8] ss:$0 sm:$0xff] }
  0x35   :  { %1061 = vmatpush3.bf16.msra.mxu1 %v1058_v20  ;;  %v1092_v10 = vpack.c.bf16 %v561_v9, %v557_v8  ;;  %v570_v12 = vld [vmem:[#allocation4 + $0xa8] sm:$0xff]  ;;  %v565_v14 = vld [vmem:[#allocation4 + $0x80] sm:$0xff]  ;;  %v560_v24 = vld [vmem:[#allocation4 + $0x58] sm:$0xff] }
  0x36   :  { %1049 = vmatpush3.bf16.msra.mxu0 %v1046_v21  ;;  %1063 = vmatprep.subr.bf16.mxu1 %v1062_v25  ;;  %v1094_v13 = vpack.c.bf16 %v570_v12, %v566_v11  ;;  %v569_v15 = vld [vmem:[#allocation4 + $0xa0] sm:$0xff]  ;;  %v551_v21 = vld [vmem:[#allocation4 + $0x10] sm:$0xff] }
  0x37   :  { %1067 = vmatprep.subr.bf16.mxu0 %v1066_v28  ;;  %v1096_v16 = vpack.c.bf16 %v569_v15, %v565_v14  ;;  %v571_v37 = vld [vmem:[#allocation4 + $0xb0] sm:$0xff]  ;;  %v577_v46 = vld [vmem:[#allocation4 + $0xe0] sm:$0xff] }
  0x38   :  { %v575_v47 = vld [vmem:[#allocation4 + $0xd0] sm:$0xff] }
  0x39   :  { %984 = vmatmul.mubr.msk.f32.vlgmr.msra.gmra.mrb[0].mxu0 %vm87_vm0, %v71_v22  ;;  %1065 = vmatpush3.bf16.msra.mxu1 %v1062_v25  ;;  %v555_v22 = vld [vmem:[#allocation4 + $0x30] sm:$0xff]  ;;  %v564_v25 = vld [vmem:[#allocation4 + $0x78] sm:$0xff] }
  0x3a   :  { %1069 = vmatpush3.bf16.msra.mxu0 %v1066_v28  ;;  %1075 = vmatprep.subr.bf16.mxu1 %v1074_v48  ;;  %v1104_v27 = vpack.c.bf16 %v555_v22, %v551_v21 }
  0x3b   :  { %1071 = vmatprep.subr.bf16.mxu0 %v1070_v38 }
  0x3e   :  { %1073 = vmatpush3.bf16.msra.mxu0 %v1070_v38  ;;  %v1112_v38 = vpack.c.bf16 %v571_v37, %v567_v36 }
  0x3f   :  { %1087 = vmatprep.subr.bf16.mxu0 %v1086_v63  ;;  %v581_v63 = vld [vmem:[%s1546_s12] sm:$0xf] }
 0x10c   :  { %v985_v30 = vpop.f32.mrb[0].mxu0 }
 0x10d   :  { %v166_v31 = vadd.f32 %v985_v30, %v912_v29  ;;  %v160_v32 = vpop.f32.mrb[1].mxu0  ;;  %v559_v30 = vld [vmem:[#allocation4 + $0x50] sm:$0xff] }
 0x10e   :  { %v161_v33 = vadd.f32 %v912_v29, %v160_v32  ;;  %v1106_v29 = vpack.c.bf16 %v564_v25, %v560_v24  ;;  %v568_v32 = vld [vmem:[#allocation4 + $0x98] sm:$0xff] }
 0x10f   :  { %v170_v35 = vmax.f32 %v166_v31, 0.0  ;;  %v563_v31 = vld [vmem:[#allocation4 + $0x70] sm:$0xff] }
 0x110   :  { %v169_v34 = vmax.f32 %v161_v33, 0.0  ;;  %v572_v33 = vld [vmem:[#allocation4 + $0xb8] sm:$0xff] }
 0x112   :  { %1002 = vmatprep.mubr.msk.f32.mxu1 %vm87_vm0, %v169_v34  ;;  %v1108_v34 = vpack.c.bf16 %v563_v31, %v559_v30 }
 0x113   :  { %1003 = vmatmul.mubr.msk.f32.vlgmr.msra.gmra.mrb[0].mxu1 %vm87_vm0, %v170_v35  ;;  %v1110_v35 = vpack.c.bf16 %v572_v33, %v568_v32 }
 0x114   :  { %1077 = vmatpush3.bf16.msra.mxu1 %v1074_v48  ;;  %v579_v48 = vld [vmem:[#allocation4 + $0xf0] sm:$0xff] }
 0x115   :  { %1079 = vmatprep.subr.bf16.mxu1 %v1078_v51  ;;  %v1116_v50 = vpack.c.bf16 %v579_v48, %v575_v47 }
 0x1e6   :  { %v1004_v40 = vpop.f32.mrb[0].mxu1 }
 0x1e7   :  { %v264_v41 = vadd.f32 %v1004_v40, %v915_v39  ;;  %v258_v42 = vpop.f32.mrb[1].mxu1  ;;  %v578_v40 = vld [vmem:[#allocation4 + $0xe8] sm:$0xff] }
 0x1e8   :  { %v259_v43 = vadd.f32 %v915_v39, %v258_v42  ;;  %v574_v39 = vld [vmem:[#allocation4 + $0xc8] sm:$0xff] }
 0x1e9   :  { %v268_v45 = vmax.f32 %v264_v41, 0.0  ;;  %v576_v41 = vld [vmem:[#allocation4 + $0xd8] sm:$0xff]  ;;  %v1098_v42 = vpack.c.bf16 %v578_v40, %v574_v39 }
 0x1ea   :  { %v267_v44 = vmax.f32 %v259_v43, 0.0  ;;  %v580_v43 = vld [vmem:[#allocation4 + $0xf8] sm:$0xff] }
 0x1ec   :  { %1013 = vmatprep.mubr.msk.f32.mxu0 %vm280_vm1, %v267_v44  ;;  %v573_v44 = vld [vmem:[#allocation4 + $0xc0] sm:$0xff] }
 0x1ed   :  { %1014 = vmatmul.mubr.msk.f32.vlgmr.msra.gmra.mrb[2].mxu0 %vm280_vm1, %v268_v45  ;;  %v1114_v45 = vpack.c.bf16 %v580_v43, %v576_v41  ;;  %v1100_v49 = vpack.c.bf16 %v577_v46, %v573_v44 }
 0x1ee   :  { %1089 = vmatpush1.bf16.msra.mxu0 %v1088_v4 }
 0x1ef   :  { %1091 = vmatprep.subr.bf16.mxu0 %v1090_v7 }
 0x1f2   :  { %1093 = vmatpush1.bf16.msra.mxu0 %v1092_v10 }
 0x1f3   :  { %1095 = vmatprep.subr.bf16.mxu0 %v1094_v13 }
 0x1f6   :  { %1097 = vmatpush1.bf16.msra.mxu0 %v1096_v16 }
 0x1f7   :  { %1099 = vmatprep.subr.bf16.mxu0 %v1098_v42 }
 0x1fa   :  { %1101 = vmatpush1.bf16.msra.mxu0 %v1100_v49 }
 0x2c0   :  { %v1015_v53 = vpop.f32.mrb[2].mxu0 }
 0x2c1   :  { %v353_v54 = vpop.f32.mrb[3].mxu0  ;;  %v359_v56 = vadd.f32 %v1015_v53, %v918_v52 }
 0x2c2   :  { %v354_v55 = vadd.f32 %v918_v52, %v353_v54  ;;  %v924_v52 = vld [vmem:[#allocation2] ss:$0 sm:$0xff] }
 0x2c4   :  { %894 = vrot.lane.b32.xlu0 %v354_v55, %s1208_s7  ;;  %1020 = vmatprep.mubr.msk.f32.mxu1 %vm371_vm2, %v354_v55 }
 0x2c5   :  { %1021 = vmatmul.mubr.msk.f32.vlgmr.msra.gmra.mrb[2].mxu1 %vm371_vm2, %v359_v56 }
 0x2c6   :  { %1081 = vmatpush3.bf16.msra.mxu1 %v1078_v51  ;;  %v1209_v51 = vmov 0.0  }
 0x2c7   :  { %1083 = vmatprep.subr.bf16.mxu1 %v1082_v59  ;;  %673 = vmatprep.mubr.f32.mxu0 %v1209_v51 }
 0x2c8   :  { %896 = vrot.lane.b32.xlu0 %v359_v56, %s1208_s7 }
 0x2ca   :  { %1085 = vmatpush3.bf16.msra.mxu1 %v1082_v59  ;;  %v583_v59 = vlaneseq }
 0x2cb   :  { %1103 = vmatprep.subr.bf16.mxu1 %v1102_v3 }
 0x2cc   :  { %v584_v60 = vshrl.u32 %v583_v59, 7 }
 0x2ce   :  { %v585_v61 = vsub.s32 0, %v584_v60  ;;  %v593_v62 = vsub.s32 2, %v584_v60  ;;  %v589_v0 = vsub.s32 1, %v584_v60  ;;  %v597_v1 = vsub.s32 3, %v584_v60 }
 0x2d0   :  { %v586_v2 = vrot.slane %v581_v63, %v585_v61  ;;  %v594_v3 = vrot.slane %v581_v63, %v593_v62  ;;  %v590_v4 = vrot.slane %v581_v63, %v589_v0  ;;  %v598_v5 = vrot.slane %v581_v63, %v597_v1 }
 0x398   :  { %v1022_v18 = vpop.f32.mrb[2].mxu1 }
 0x399   :  { %v450_v19 = vadd.f32 %v1022_v18, %v921_v17  ;;  %v444_v20 = vpop.f32.mrb[3].mxu1 }
 0x39a   :  { %v445_v23 = vadd.f32 %v921_v17, %v444_v20 }
 0x39b   :  { %v454_v28 = vmax.f32 %v450_v19, 0.0 }
 0x39c   :  { %v453_v26 = vmax.f32 %v445_v23, 0.0 }
 0x39e   :  { %1031 = vmatprep.mubr.msk.f32.mxu1 %vm280_vm1, %v453_v26 }
 0x39f   :  { %1032 = vmatmul.mubr.msk.f32.vlgmr.msra.gmra.mrb[4].mxu1 %vm280_vm1, %v454_v28 }
 0x3a0   :  { %1105 = vmatpush1.bf16.msra.mxu1 %v1104_v27  ;;  %750 = vmatprep.mubr.f32.mxu1 %v1209_v51 }
 0x3a1   :  { %1107 = vmatprep.subr.bf16.mxu1 %v1106_v29 }
 0x3a4   :  { %1109 = vmatpush1.bf16.msra.mxu1 %v1108_v34 }
 0x3a5   :  { %1111 = vmatprep.subr.bf16.mxu1 %v1110_v35 }
 0x3a8   :  { %1113 = vmatpush1.bf16.msra.mxu1 %v1112_v38 }
 0x3a9   :  { %1115 = vmatprep.subr.bf16.mxu1 %v1114_v45 }
 0x3ac   :  { %1117 = vmatpush1.bf16.msra.mxu1 %v1116_v50 }
 0x472   :  { %v1033_v53 = vpop.f32.mrb[4].mxu1 }
 0x473   :  { %v538_v54 = vpop.f32.mrb[5].mxu1  ;;  %v544_v56 = vadd.f32 %v1033_v53, %v924_v52 }
 0x474   :  { %v539_v55 = vadd.f32 %v924_v52, %v538_v54 }
 0x475   :  { %v548_v58 = vmax.f32 %v544_v56, 0.0 }
 0x476   :  { %v547_v57 = vmax.f32 %v539_v55, 0.0 }
 0x478   :  { %927 = vmatmul.mubr.msk.f32.vlgmr.msra.gmra.mrb[4].mxu0 %vm87_vm0, %v547_v57  ;;  %929 = vmatmul.mubr.msk.f32.vlgmr.msra.gmra.mrb[6].mxu1 %vm87_vm0, %v547_v57 }
 0x479   :  { %679 = vmatprep.mubr.f32.mxu0 %v1209_v51  ;;  %756 = vmatprep.mubr.f32.mxu1 %v1209_v51 }
 0x47c   :  { %928 = vmatmul.mubr.msk.f32.gmra.mrb[6].mxu0 %vm87_vm0, %v548_v58  ;;  %930 = vmatmul.mubr.msk.f32.gmra.mrb[8].mxu1 %vm87_vm0, %v548_v58 }
 0x54b   :  { %v675_v6 = vpop.f32.mrb[4].mxu0  ;;  %v752_v7 = vpop.f32.mrb[6].mxu1 }
 0x54c   :  { %v676_v8 = vadd.f32 %v675_v6, %v586_v2  ;;  %v1426_v9 = vadd.f32 %v752_v7, %v594_v3  ;;  %v677_v10 = vpop.f32.mrb[5].mxu0  ;;  %v754_v11 = vpop.f32.mrb[7].mxu1 }
 0x54d   :  { %v1428_v12 = vadd.f32 %v677_v10, %v590_v4  ;;  %v1430_v13 = vadd.f32 %v754_v11, %v598_v5 }
 0x54e   :  { %763 = vst.msk [vmem:[%s1547_s13] sm:$0xff] %vm87_vm0, %v676_v8  ;;  %v765_v14 = vmul.f32 1.442695, %v676_v8  ;;  %v793_v15 = vand.u32 2147483647, %v1426_v9 }
 0x54f   :  { %v776_v16 = vmul.f32 0.5, %v1428_v12  ;;  %v792_v17 = vand.u32 2147483647, %v1428_v12  ;;  %v681_v18 = vpop.f32.mrb[6].mxu0  ;;  %v794_v20 = vand.u32 2147483647, %v1430_v13 }
 0x550   :  { %1124 = vpow2.f32 %v765_v14  ;;  %v799_v19 = vsub.f32 0.0, %v793_v15  ;;  %v682_v21 = vadd.f32 %v681_v18, %v586_v2  ;;  %v758_v22 = vpop.f32.mrb[8].mxu1  ;;  %v683_v23 = vpop.f32.mrb[7].mxu0 }
 0x551   :  { %1126 = vtanh.f32 %v776_v16  ;;  %v798_v24 = vsub.f32 0.0, %v792_v17  ;;  %v1440_v25 = vadd.f32 %v758_v22, %v594_v3  ;;  %v1442_v26 = vadd.f32 %v683_v23, %v590_v4  ;;  %v760_v27 = vpop.f32.mrb[9].mxu1 }
 0x552   :  { %v806_v28 = vmul.f32 1.442695, %v799_v19  ;;  %v800_v29 = vsub.f32 0.0, %v794_v20  ;;  %764 = vst.msk [vmem:[%s1547_s13 + $0x20] sm:$0xff] %vm87_vm0, %v682_v21  ;;  %v1448_v30 = vadd.f32 %v760_v27, %v598_v5  ;;  %v767_v32 = vmul.f32 1.442695, %v682_v21 }
 0x553   :  { %v804_v31 = vmul.f32 1.442695, %v798_v24  ;;  %v796_v33 = vand.u32 2147483647, %v1440_v25  ;;  %v777_v35 = vmul.f32 0.5, %v1442_v26  ;;  %v787_v16 = vmax.f32 %v1426_v9, 0.0 }
 0x554   :  { %1128 = vpow2.f32 %v806_v28  ;;  %v808_v34 = vmul.f32 1.442695, %v800_v29  ;;  %v795_v36 = vand.u32 2147483647, %v1442_v26  ;;  %v797_v38 = vand.u32 2147483647, %v1448_v30 }
 0x555   :  { %1130 = vpow2.f32 %v804_v31  ;;  %v802_v37 = vsub.f32 0.0, %v796_v33  ;;  %v786_v17 = vmax.f32 %v1428_v12, 0.0  ;;  %v788_v21 = vmax.f32 %v1430_v13, 0.0 }
 0x556   :  { %1132 = vpow2.f32 %v808_v34  ;;  %v801_v39 = vsub.f32 0.0, %v795_v36  ;;  %v803_v41 = vsub.f32 0.0, %v797_v38  ;;  %v790_v23 = vmax.f32 %v1440_v25, 0.0 }
 0x557   :  { %1134 = vpow2.f32 %v767_v32  ;;  %v812_v40 = vmul.f32 1.442695, %v802_v37 }
 0x558   :  { %1136 = vtanh.f32 %v777_v35  ;;  %v810_v42 = vmul.f32 1.442695, %v801_v39  ;;  %v814_v43 = vmul.f32 1.442695, %v803_v41 }
 0x559   :  { %1138 = vpow2.f32 %v812_v40 }
 0x55a   :  { %v1125_v44 = vpop.eup %1124  ;;  %1140 = vpow2.f32 %v810_v42 }
 0x55b   :  { %v1127_v45 = vpop.eup %1126  ;;  %v769_v46 = vmax.f32 %v1125_v44, 1e-05  ;;  %1142 = vpow2.f32 %v814_v43 }
 0x55c   :  { %v780_v47 = vmul.f32 0.5, %v1127_v45 }
 0x55d   :  { %v771_v48 = vmin.f32 %v769_v46, 1000000.0 }
 0x55e   :  { %v1129_v49 = vpop.eup %1128  ;;  %v782_v50 = vadd.f32 0.5, %v780_v47 }
 0x55f   :  { %v1131_v52 = vpop.eup %1130  ;;  %774 = vst.msk [vmem:[%s1547_s13] sm:$0xff] %vm773_vm3, %v771_v48  ;;  %v825_v53 = vadd.f32 1.0, %v1129_v49  ;;  %v828_v62 = vmul.f32 -0.5, %v1129_v49  ;;  %v831_v5 = vand.u32 2147483647, %v1129_v49 }
 0x560   :  { %v1133_v54 = vpop.eup %1132  ;;  %784 = vst.msk [vmem:[%s1547_s13 + $0x8] sm:$0xff] %vm87_vm0, %v782_v50  ;;  %v816_v55 = vadd.f32 1.0, %v1131_v52  ;;  %v819_v1 = vmul.f32 -0.5, %v1131_v52  ;;  %v822_v15 = vand.u32 2147483647, %v1131_v52 }
 0x561   :  { %v1135_v56 = vpop.eup %1134  ;;  %1144 = vlog2.f32 %v825_v53  ;;  %v834_v57 = vadd.f32 1.0, %v1133_v54  ;;  %v837_v3 = vmul.f32 -0.5, %v1133_v54  ;;  %v829_v7 = vadd.f32 1.0, %v828_v62 }
 0x562   :  { %v1137_v58 = vpop.eup %1136  ;;  %1146 = vlog2.f32 %v816_v55  ;;  %v770_v60 = vmax.f32 %v1135_v56, 1e-05  ;;  %v820_v14 = vadd.f32 1.0, %v819_v1  ;;  %vm1478_vm4 = vcmp.lt.f32.partialorder %v831_v5, 0.0004427343 }
 0x563   :  { %v1139_v59 = vpop.eup %1138  ;;  %1148 = vlog2.f32 %v834_v57  ;;  %v781_v4 = vmul.f32 0.5, %v1137_v58  ;;  %v838_v18 = vadd.f32 1.0, %v837_v3  ;;  %v840_v22 = vand.u32 2147483647, %v1133_v54 }
 0x564   :  { %v1462_v61 = vpop.eup %1140  ;;  %v852_v63 = vadd.f32 1.0, %v1139_v59  ;;  %v772_v2 = vmin.f32 %v770_v60, 1000000.0  ;;  %v855_v8 = vmul.f32 -0.5, %v1139_v59  ;;  %v830_v12 = vmul.f32 %v1129_v49, %v829_v7 }
 0x565   :  { %v1464_v0 = vpop.eup %1142  ;;  %v843_v6 = vadd.f32 1.0, %v1462_v61  ;;  %v783_v10 = vadd.f32 0.5, %v781_v4  ;;  %v846_v28 = vmul.f32 -0.5, %v1462_v61  ;;  %v821_v32 = vmul.f32 %v1131_v52, %v820_v14 }
 0x566   :  { %1150 = vlog2.f32 %v852_v63  ;;  %775 = vst.msk [vmem:[%s1547_s13 + $0x20] sm:$0xff] %vm773_vm3, %v772_v2  ;;  %v861_v11 = vadd.f32 1.0, %v1464_v0  ;;  %v856_v27 = vadd.f32 1.0, %v855_v8  ;;  %vm823_vm5 = vcmp.lt.f32.partialorder %v822_v15, 0.0004427343 }
 0x567   :  { %1152 = vlog2.f32 %v843_v6  ;;  %785 = vst.msk [vmem:[%s1547_s13 + $0x28] sm:$0xff] %vm87_vm0, %v783_v10  ;;  %v864_v33 = vmul.f32 -0.5, %v1464_v0  ;;  %v839_v35 = vmul.f32 %v1133_v54, %v838_v18  ;;  %v858_v25 = vand.u32 2147483647, %v1139_v59 }
 0x568   :  { %1154 = vlog2.f32 %v861_v11  ;;  %vm841_vm8 = vcmp.lt.f32.partialorder %v840_v22, 0.0004427343  ;;  %v849_v38 = vand.u32 2147483647, %v1462_v61  ;;  %v857_v42 = vmul.f32 %v1139_v59, %v856_v27 }
 0x569   :  { %v847_v43 = vadd.f32 1.0, %v846_v28  ;;  %v865_v47 = vadd.f32 1.0, %v864_v33  ;;  %vm859_vm9 = vcmp.lt.f32.partialorder %v858_v25, 0.0004427343  ;;  %v867_v49 = vand.u32 2147483647, %v1464_v0 }
 0x56a   :  { %v789_v55 = vmax.f32 %v1442_v26, 0.0  ;;  %vm850_vm10 = vcmp.lt.f32.partialorder %v849_v38, 0.0004427343  ;;  %v791_v3 = vmax.f32 %v1448_v30, 0.0 }
 0x56b   :  { %v1145_v19 = vpop.eup %1144  ;;  %v848_v59 = vmul.f32 %v1462_v61, %v847_v43  ;;  %v866_v1 = vmul.f32 %v1464_v0, %v865_v47  ;;  %vm868_vm11 = vcmp.lt.f32.partialorder %v867_v49, 0.0004427343  ;;  %v895_v61 = vpop.permute.xlu0 %894 }
 0x56c   :  { %v1147_v9 = vpop.eup %1146  ;;  %v827_v24 = vmul.f32 0.6931472, %v1145_v19 }
 0x56d   :  { %v1149_v29 = vpop.eup %1148  ;;  %v818_v31 = vmul.f32 0.6931472, %v1147_v9 }
 0x56e   :  { %v833_v34 = vsel %vm1478_vm4, %v830_v12, %v827_v24  ;;  %v836_v13 = vmul.f32 0.6931472, %v1149_v29 }
 0x56f   :  { %v871_v36 = vadd.f32 %v833_v34, %v787_v16  ;;  %v824_v37 = vsel %vm823_vm5, %v821_v32, %v818_v31  ;;  %v897_v11 = vpop.permute.xlu0 %896 }
 0x570   :  { %v1151_v39 = vpop.eup %1150  ;;  %v870_v40 = vadd.f32 %v824_v37, %v786_v17  ;;  %v842_v41 = vsel %vm841_vm8, %v839_v35, %v836_v13 }
 0x571   :  { %v877_v44 = vmax.f32 %v871_v36, 0.0001  ;;  %v872_v45 = vadd.f32 %v842_v41, %v788_v21  ;;  %v854_v46 = vmul.f32 0.6931472, %v1151_v39  ;;  %v1153_v50 = vpop.eup %1152 }
 0x572   :  { %v876_v48 = vmax.f32 %v870_v40, 0.0001  ;;  %v1155_v56 = vpop.eup %1154  ;;  %v845_v60 = vmul.f32 0.6931472, %v1153_v50 }
 0x573   :  { %v883_v52 = vmin.f32 %v877_v44, 10000.0  ;;  %v878_v53 = vmax.f32 %v872_v45, 0.0001  ;;  %v860_v54 = vsel %vm859_vm9, %v857_v42, %v854_v46  ;;  %v863_v63 = vmul.f32 0.6931472, %v1155_v56 }
 0x574   :  { %v882_v57 = vmin.f32 %v876_v48, 10000.0  ;;  %v874_v58 = vadd.f32 %v860_v54, %v790_v23  ;;  %v851_v2 = vsel %vm850_vm10, %v848_v59, %v845_v60 }
 0x575   :  { %889 = vst [vmem:[%s1547_s13 + $0x10] sm:$0xff] %v883_v52  ;;  %v884_v62 = vmin.f32 %v878_v53, 10000.0  ;;  %v873_v4 = vadd.f32 %v851_v2, %v789_v55  ;;  %v869_v5 = vsel %vm868_vm11, %v866_v1, %v863_v63 }
 0x576   :  { %888 = vst.msk [vmem:[%s1547_s13 + $0x8] sm:$0xff] %vm773_vm3, %v882_v57  ;;  %v880_v26 = vmax.f32 %v874_v58, 0.0001  ;;  %v875_v6 = vadd.f32 %v869_v5, %v791_v3 }
 0x577   :  { %890 = vst.msk [vmem:[%s1547_s13 + $0x18] sm:$0xff] %vm87_vm0, %v884_v62  ;;  %v879_v30 = vmax.f32 %v873_v4, 0.0001 }
 0x578   :  { %901 = vst.msk [vmem:[%s1547_s13 + $0x18] sm:$0xff] %vm900_vm6, %v895_v61  ;;  %v886_v0 = vmin.f32 %v880_v26, 10000.0  ;;  %v881_v7 = vmax.f32 %v875_v6, 0.0001 }
 0x579   :  { %904 = vst.msk [vmem:[%s1547_s13 + $0x18] sm:$0xff] %vm903_vm7, %v1209_v51  ;;  %v885_v8 = vmin.f32 %v879_v30, 10000.0 }
 0x57a   :  { %892 = vst [vmem:[%s1547_s13 + $0x30] sm:$0xff] %v886_v0  ;;  %v887_v10 = vmin.f32 %v881_v7, 10000.0 }
 0x57b   :  { %891 = vst.msk [vmem:[%s1547_s13 + $0x28] sm:$0xff] %vm773_vm3, %v885_v8 }
 0x57c   :  { %893 = vst.msk [vmem:[%s1547_s13 + $0x38] sm:$0xff] %vm87_vm0, %v887_v10 }
 0x57d   :  { %902 = vst.msk [vmem:[%s1547_s13 + $0x38] sm:$0xff] %vm900_vm6, %v897_v11 }
 0x57e   :  { %905 = vst.msk [vmem:[%s1547_s13 + $0x38] sm:$0xff] %vm903_vm7, %v1209_v51 }
 0x57f   :  { %910 = vsyncpa [#allocation3], 1 }
 0x580   :  { %911 = vsyncpa [#allocation5], 1 }

</bundles_post_ra>
